<compile_context>
chip_gen: v7x
topology: tpu7x:2x2x1
jax: 0.10.0
libtpu: 0.0.40
codegen_flags: <defaults>
</compile_context>

<pallas_src>
import functools

import jax
import jax.numpy as jnp
from jax.experimental import pallas as pl
from jax.experimental.pallas import tpu as pltpu

EPS = 1e-5

_VMEM_TILE_BUDGET_BYTES = 8 * 1024 * 1024  # per-step streaming budget (safe on v5e/v6e/v7x)
_COMPILER_PARAMS = pltpu.CompilerParams(
    dimension_semantics=("parallel",),          # shard the M axis across TCs on v7x
    vmem_limit_bytes=32 * 1024 * 1024,          # explicit, <= v7x physical (64 MiB)
)


# ------------------------------------------------------------------------ small helpers
def _round_up(x, m):
    return (x + m - 1) // m * m


def _pad2(a, rows, cols):
    r, c = a.shape
    return jnp.pad(a, ((0, rows - r), (0, cols - c)))


def _choose_tile_m(m, stream_bytes_per_row):
    """Rows per tile: big enough to amortize per-grid-step overhead, small enough that
    the double-buffered streams of the heaviest call stay well under scoped VMEM."""
    tm = _VMEM_TILE_BUDGET_BYTES // max(stream_bytes_per_row, 1)
    tm = max(8, min(1024, (tm // 8) * 8))
    return min(tm, _round_up(m, 8))


# ------------------------------------------------------------------------------ kernels
def _make_conv_kernel(tm, m_real, n_branches):
    """n_branches independent (wide-K matmul + bias) over the same row tile, each also
    emitting per-tile BN partial statistics (sum, sum-of-squares), padding-row masked."""

    def kernel(*refs):
        n_in = 3 * n_branches
        row = (jax.lax.broadcasted_iota(jnp.int32, (tm, 1), 0)
               + pl.program_id(0) * tm)
        valid = row < m_real                                    # mask M-padding rows
        for br in range(n_branches):
            taps_ref, w_ref, b_ref = refs[3 * br: 3 * br + 3]
            y_ref, stats_ref = refs[n_in + 2 * br: n_in + 2 * br + 2]
            acc = jnp.dot(taps_ref[...], w_ref[...],
                          preferred_element_type=jnp.float32)  # bf16 x bf16 -> f32 acc
            acc = acc + b_ref[...]                              # (1, Cp) broadcast
            y_ref[...] = acc
            acc_v = jnp.where(valid, acc, 0.0)
            s1 = jnp.sum(acc_v, axis=0, keepdims=True)          # (1, Cp)
            s2 = jnp.sum(acc_v * acc_v, axis=0, keepdims=True)  # (1, Cp)
            stats_ref[...] = jnp.concatenate([s1, s2], axis=0)[None]  # (1, 2, Cp)

    return kernel


def _make_apply_kernel(n_bn, has_res, relu):
    """Fused BN-apply (y*scale + shift) for n_bn branches [+ residual] [+ ReLU]."""

    def kernel(*refs):
        out_ref = refs[-1]
        acc = None
        idx = 0
        for _ in range(n_bn):
            y, sc, sh = refs[idx][...], refs[idx + 1][...], refs[idx + 2][...]
            idx += 3
            t = y * sc + sh
            acc = t if acc is None else acc + t
        if has_res:
            acc = acc + refs[idx][...]
        if relu:
            acc = jnp.maximum(acc, 0.0)
        out_ref[...] = acc

    return kernel


# ------------------------------------------------------------------------ pallas wrappers
def _conv_bias_stats(branches, tm, m_real):
    """branches: list of (taps_p (M_pad, Kc_p) bf16, w_p (Kc_p, Cp) bf16, b_p (1, Cp) f32).
    One pallas_call; returns a list of (conv+bias (M_pad, Cp) f32, stats (nt, 2, Cp) f32)."""
    m_pad = branches[0][0].shape[0]
    cp = branches[0][1].shape[1]
    nt = m_pad // tm
    args, in_specs = [], []
    for taps_p, w_p, b_p in branches:
        kc_p = taps_p.shape[1]
        args += [taps_p, w_p, b_p]
        in_specs += [
            pl.BlockSpec((tm, kc_p), lambda i: (i, 0)),       # taps: streamed over M
            pl.BlockSpec((kc_p, cp), lambda i: (0, 0)),       # weights: resident
            pl.BlockSpec((1, cp), lambda i: (0, 0)),          # bias: resident
        ]
    out_specs, out_shape = [], []
    for _ in branches:
        out_specs += [pl.BlockSpec((tm, cp), lambda i: (i, 0)),       # conv out (lane-dense)
                      pl.BlockSpec((1, 2, cp), lambda i: (i, 0, 0))]  # per-tile (sum, sumsq)
        out_shape += [jax.ShapeDtypeStruct((m_pad, cp), jnp.float32),
                      jax.ShapeDtypeStruct((nt, 2, cp), jnp.float32)]
    outs = pl.pallas_call(
        _make_conv_kernel(tm, m_real, len(branches)),
        grid=(nt,),
        in_specs=in_specs,
        out_specs=out_specs,
        out_shape=out_shape,
        compiler_params=_COMPILER_PARAMS,
    )(*args)
    return [(outs[2 * i], outs[2 * i + 1]) for i in range(len(branches))]


def _bn_apply(bn_inputs, residual, relu, tm):
    """bn_inputs: list of (y (M_pad,Cp) f32, scale (1,Cp), shift (1,Cp)); residual or None."""
    m_pad, cp = bn_inputs[0][0].shape
    nt = m_pad // tm
    args, in_specs = [], []
    for y, sc, sh in bn_inputs:
        args += [y, sc, sh]
        in_specs += [
            pl.BlockSpec((tm, cp), lambda i: (i, 0)),
            pl.BlockSpec((1, cp), lambda i: (0, 0)),
            pl.BlockSpec((1, cp), lambda i: (0, 0)),
        ]
    if residual is not None:
        args.append(residual)
        in_specs.append(pl.BlockSpec((tm, cp), lambda i: (i, 0)))
    return pl.pallas_call(
        _make_apply_kernel(len(bn_inputs), residual is not None, relu),
        grid=(nt,),
        in_specs=in_specs,
        out_specs=pl.BlockSpec((tm, cp), lambda i: (i, 0)),
        out_shape=jax.ShapeDtypeStruct((m_pad, cp), jnp.float32),
        compiler_params=_COMPILER_PARAMS,
    )(*args)


# ---------------------------------------------------------------------------------- glue
def _im2col_flat(x_nhwc, k, stride, pad):
    """Pure slicing/reshape: returns taps (N*Ho*Wo, k*k*C), Ho, Wo."""
    n, h, w, c = x_nhwc.shape
    xp = jnp.pad(x_nhwc, ((0, 0), (pad, pad), (pad, pad), (0, 0)))
    ho = (h + 2 * pad - k) // stride + 1
    wo = (w + 2 * pad - k) // stride + 1
    cols = []
    for i in range(k):
        for j in range(k):
            sl = xp[:, i: i + (ho - 1) * stride + 1: stride,
                       j: j + (wo - 1) * stride + 1: stride, :]
            cols.append(sl.reshape(n * ho * wo, c))
    return jnp.concatenate(cols, axis=-1), ho, wo


def _reshape_weight(w_oihw):
    """(Cout, Cin, KH, KW) -> (KH*KW*Cin, Cout), row order (kh, kw, cin) to match im2col."""
    cout, cin, kh, kw = w_oihw.shape
    return jnp.transpose(w_oihw, (2, 3, 1, 0)).reshape(kh * kw * cin, cout)


def _bn_scale_shift(stats, m_real, gamma_p, beta_p, eps):
    """Reduce per-tile partials into per-channel BN scale/shift (train-mode batch stats)."""
    s1 = jnp.sum(stats[:, 0, :], axis=0)
    s2 = jnp.sum(stats[:, 1, :], axis=0)
    mean = s1 / m_real
    var = jnp.maximum(s2 / m_real - mean * mean, 0.0)
    inv = jax.lax.rsqrt(var + eps)
    scale = gamma_p * inv
    shift = beta_p - mean * scale
    return scale.reshape(1, -1), shift.reshape(1, -1)


def _prep_branch(taps, w_oihw, bias, m_pad, cp):
    """Pad/cast one conv branch's im2col slab, weights and bias for the conv kernel."""
    kc = taps.shape[1]
    kc_p = _round_up(kc, 8)
    cout = bias.shape[0]
    taps_p = _pad2(taps, m_pad, kc_p).astype(jnp.bfloat16)
    w_p = _pad2(_reshape_weight(w_oihw), kc_p, cp).astype(jnp.bfloat16)
    b_p = jnp.pad(bias, (0, cp - cout)).reshape(1, cp)
    return taps_p, w_p, b_p


@functools.partial(jax.jit, static_argnames=("stride",))
def residual_block_forward(x_nchw, params, stride):
    """Pallas implementation of ResidualBlock.forward (NCHW in, NCHW out)."""
    x = jnp.transpose(x_nchw, (0, 2, 3, 1)).astype(jnp.float32)  # NHWC
    n, h, w, cin = x.shape
    cout = params["w1"].shape[0]
    cp = _round_up(cout, 128)                                    # lane-dense channel axis
    has_proj = (stride != 1) or (cin != cout)

    taps1, ho, wo = _im2col_flat(x, 3, stride, 1)                # (M, 9*cin)
    m = n * ho * wo

    kc1_p = _round_up(9 * cin, 8)
    kc2_p = _round_up(9 * cout, 8)
    kcs_p = _round_up(cin, 8) if has_proj else 0
    n_y2 = 2 if has_proj else 1
    per_row = 2 * max(2 * kc1_p + 4 * cp,                        # conv1 call
                      2 * (kc2_p + kcs_p) + n_y2 * 4 * cp,       # conv2 (+shortcut) call
                      3 * 4 * cp)                                # final apply call
    tm = _choose_tile_m(m, per_row)
    m_pad = _round_up(m, tm)

    # ---- conv1 (3x3, stride, pad=1): conv + bias + per-tile stats
    (y1c, stats1), = _conv_bias_stats(
        [_prep_branch(taps1, params["w1"], params["b1"], m_pad, cp)], tm, m)
    g1 = jnp.pad(params["g1"], (0, cp - cout))
    be1 = jnp.pad(params["beta1"], (0, cp - cout))
    sc1, sh1 = _bn_scale_shift(stats1, m, g1, be1, EPS)

    # ---- BN1 + ReLU applied on the fly while building the conv2 im2col slab.
    # This is pure elementwise work on the gather operand; XLA fuses it with the
    # pad/gather/bf16-cast that produces taps2, so no extra HBM pass and no extra launch.
    y1 = jnp.maximum(y1c[:m, :cout] * sc1[:, :cout] + sh1[:, :cout], 0.0)
    taps2, _, _ = _im2col_flat(y1.reshape(n, ho, wo, cout), 3, 1, 1)   # (M, 9*cout)

    # ---- conv2 (3x3, stride=1, pad=1) [+ 1x1 projection shortcut] in ONE pallas_call
    branches = [_prep_branch(taps2, params["w2"], params["b2"], m_pad, cp)]
    if has_proj:
        taps_s, _, _ = _im2col_flat(x, 1, stride, 0)             # (M, cin)
        branches.append(_prep_branch(taps_s, params["ws"], params["bs"], m_pad, cp))
    conv_outs = _conv_bias_stats(branches, tm, m)

    bn_names = [("g2", "beta2")] + ([("gs", "betas")] if has_proj else [])
    bn_inputs = []
    for (y, stats), (gk, bk) in zip(conv_outs, bn_names):
        g_p = jnp.pad(params[gk], (0, cp - cout))
        b_p = jnp.pad(params[bk], (0, cp - cout))
        sc, sh = _bn_scale_shift(stats, m, g_p, b_p, EPS)
        bn_inputs.append((y, sc, sh))

    # ---- final fused normalize(+normalize | +residual) + ReLU
    if has_proj:
        out_flat = _bn_apply(bn_inputs, None, True, tm)
    else:
        res = _pad2(x.reshape(n * h * w, cin), m_pad, cp)
        out_flat = _bn_apply(bn_inputs, res, True, tm)

    out = out_flat[:m, :cout].reshape(n, ho, wo, cout)
    return jnp.transpose(out, (0, 3, 1, 2))                      # back to NCHW


# --------------------------------------------------------------------- param init / ref
def init_params(key, cin, cout, stride):
    ks = jax.random.split(key, 12)
    p = {
        "w1": 0.1 * jax.random.normal(ks[0], (cout, cin, 3, 3), jnp.float32),
        "b1": 0.05 * jax.random.normal(ks[1], (cout,), jnp.float32),
        "g1": 1.0 + 0.1 * jax.random.normal(ks[2], (cout,), jnp.float32),
        "beta1": 0.05 * jax.random.normal(ks[3], (cout,), jnp.float32),
        "w2": 0.1 * jax.random.normal(ks[4], (cout, cout, 3, 3), jnp.float32),
        "b2": 0.05 * jax.random.normal(ks[5], (cout,), jnp.float32),
        "g2": 1.0 + 0.1 * jax.random.normal(ks[6], (cout,), jnp.float32),
        "beta2": 0.05 * jax.random.normal(ks[7], (cout,), jnp.float32),
    }
    if stride != 1 or cin != cout:
        p.update({
            "ws": 0.1 * jax.random.normal(ks[8], (cout, cin, 1, 1), jnp.float32),
            "bs": 0.05 * jax.random.normal(ks[9], (cout,), jnp.float32),
            "gs": 1.0 + 0.1 * jax.random.normal(ks[10], (cout,), jnp.float32),
            "betas": 0.05 * jax.random.normal(ks[11], (cout,), jnp.float32),
        })
    return p


def ref_block(x, params, stride, eps=EPS):
    """Plain-JAX reference matching PyTorch ResidualBlock (train-mode BN).
    Conv inputs are rounded to bf16 (accumulate in f32) to match the kernel's
    bf16 MXU matmul precision; everything else stays f32."""
    q = lambda a: a.astype(jnp.bfloat16).astype(jnp.float32)

    def conv(xx, w, b, s, p):
        y = jax.lax.conv_general_dilated(
            q(xx), q(w), (s, s), [(p, p), (p, p)],
            dimension_numbers=("NCHW", "OIHW", "NCHW"),
            precision=jax.lax.Precision.HIGHEST)
        return y + b[None, :, None, None]

    def bn(xx, g, be):
        mu = xx.mean(axis=(0, 2, 3), keepdims=True)
        v = ((xx - mu) ** 2).mean(axis=(0, 2, 3), keepdims=True)
        return (xx - mu) * jax.lax.rsqrt(v + eps) * g[None, :, None, None] + be[None, :, None, None]

    y = jax.nn.relu(bn(conv(x, params["w1"], params["b1"], stride, 1), params["g1"], params["beta1"]))
    y = bn(conv(y, params["w2"], params["b2"], 1, 1), params["g2"], params["beta2"])
    if "ws" in params:
        s = bn(conv(x, params["ws"], params["bs"], stride, 0), params["gs"], params["betas"])
    else:
        s = x
    return jax.nn.relu(y + s)


# -------------------------------------------------------------------------------- main
if __name__ == "__main__":
    key = jax.random.PRNGKey(0)
    kx, kp1, kp2 = jax.random.split(key, 3)

    # Case 1: projection shortcut (in_channels != out_channels, stride=2)
    x = jax.random.normal(kx, (2, 4, 16, 16), jnp.float32)  # NCHW
    params1 = init_params(kp1, cin=4, cout=8, stride=2)
    out1 = jax.block_until_ready(residual_block_forward(x, params1, stride=2))
    ref1 = ref_block(x, params1, stride=2)
    assert out1.shape == (2, 8, 8, 8), out1.shape
    assert jnp.allclose(out1, ref1, atol=1e-2, rtol=1e-2), float(jnp.max(jnp.abs(out1 - ref1)))

    # Case 2: identity shortcut (in_channels == out_channels, stride=1)
    params2 = init_params(kp2, cin=4, cout=4, stride=1)
    out2 = jax.block_until_ready(residual_block_forward(x, params2, stride=1))
    ref2 = ref_block(x, params2, stride=1)
    assert out2.shape == (2, 4, 16, 16), out2.shape
    assert jnp.allclose(out2, ref2, atol=1e-2, rtol=1e-2), float(jnp.max(jnp.abs(out2 - ref2)))

    print("KERNEL_OK")
</pallas_src>

<mosaic_0001>
module attributes {stable_mosaic.version = 11 : i64} {
  func.func @kernel(%arg0: i32, %arg1: memref<128x40xbf16, #tpu.memory_space<vmem>>, %arg2: memref<40x128xbf16, #tpu.memory_space<vmem>>, %arg3: memref<1x128xf32, #tpu.memory_space<vmem>>, %arg4: memref<128x128xf32, #tpu.memory_space<vmem>>, %arg5: memref<1x2x128xf32, #tpu.memory_space<vmem>>) attributes {dimension_semantics = [#tpu.dimension_semantics<parallel>], iteration_bounds = array<i64: 1>, scalar_prefetch = 0 : i64, scratch_operands = 0 : i64, tpu.core_type = #tpu.core_type<tc>, window_params = [{transform_indices = @transform_0, window_bounds = array<i64: 128, 40>}, {pipeline_mode = #tpu.pipeline_mode<synchronous>, transform_indices = @transform_1, window_bounds = array<i64: 40, 128>}, {pipeline_mode = #tpu.pipeline_mode<synchronous>, transform_indices = @transform_2, window_bounds = array<i64: 1, 128>}, {transform_indices = @transform_3, window_bounds = array<i64: 128, 128>}, {transform_indices = @transform_4, window_bounds = array<i64: 1, 2, 128>}]} {
    %0 = tpu.iota {dimensions = array<i32: 0>} : vector<128x1xi32>
    %c128_i32 = arith.constant 128 : i32
    %1 = arith.muli %arg0, %c128_i32 : i32
    %2 = vector.broadcast %1 : i32 to vector<128x1xi32>
    %3 = arith.addi %0, %2 : vector<128x1xi32>
    %c128_i32_0 = arith.constant 128 : i32
    %4 = vector.broadcast %c128_i32_0 : i32 to vector<128x1xi32>
    %5 = arith.cmpi slt, %3, %4 : vector<128x1xi32>
    %c0 = arith.constant 0 : index
    %c0_1 = arith.constant 0 : index
    %6 = vector.load %arg1[%c0, %c0_1] : memref<128x40xbf16, #tpu.memory_space<vmem>>, vector<128x40xbf16>
    %c0_2 = arith.constant 0 : index
    %c0_3 = arith.constant 0 : index
    %7 = vector.load %arg2[%c0_2, %c0_3] : memref<40x128xbf16, #tpu.memory_space<vmem>>, vector<40x128xbf16>
    %cst = arith.constant dense<0.000000e+00> : vector<128x128xf32>
    %8 = tpu.matmul %6, %7, %cst {dimension_numbers = #tpu.dot_dimension_numbers<[1], [0], [0], [1], [0, 0, 1, 1], [], []>} : vector<128x40xbf16>, vector<40x128xbf16>, vector<128x128xf32> -> vector<128x128xf32>
    %c0_4 = arith.constant 0 : index
    %c0_5 = arith.constant 0 : index
    %9 = vector.load %arg3[%c0_4, %c0_5] : memref<1x128xf32, #tpu.memory_space<vmem>>, vector<1x128xf32>
    %10 = vector.broadcast %9 : vector<1x128xf32> to vector<128x128xf32>
    %11 = arith.addf %8, %10 : vector<128x128xf32>
    %c0_6 = arith.constant 0 : index
    %c0_7 = arith.constant 0 : index
    %12 = vector.load %arg4[%c0_6, %c0_7] : memref<128x128xf32, #tpu.memory_space<vmem>>, vector<128x128xf32>
    tpu.vector_store %arg4[%c0_6, %c0_7], %11 {strides = array<i32>} : memref<128x128xf32, #tpu.memory_space<vmem>>, vector<128x128xf32>,
    %cst_8 = arith.constant 0.000000e+00 : f32
    %13 = vector.shape_cast %5 : vector<128x1xi1> to vector<128x1xi1>
    %14 = vector.broadcast %13 : vector<128x1xi1> to vector<128x128xi1>
    %15 = vector.broadcast %cst_8 : f32 to vector<128x128xf32>
    %16 = arith.select %14, %11, %15 : vector<128x128xi1>, vector<128x128xf32>
    %cst_9 = arith.constant dense<0.000000e+00> : vector<128xf32>
    %17 = vector.multi_reduction <add>, %16, %cst_9 [0] : vector<128x128xf32> to vector<128xf32>
    %18 = vector.shape_cast %17 : vector<128xf32> to vector<1x128xf32>
    %19 = arith.mulf %16, %16 : vector<128x128xf32>
    %cst_10 = arith.constant dense<0.000000e+00> : vector<128xf32>
    %20 = vector.multi_reduction <add>, %19, %cst_10 [0] : vector<128x128xf32> to vector<128xf32>
    %21 = vector.shape_cast %20 : vector<128xf32> to vector<1x128xf32>
    %22 = tpu.concatenate %18, %21 in 0 : vector<1x128xf32>, vector<1x128xf32> -> vector<2x128xf32>
    %23 = vector.shape_cast %22 : vector<2x128xf32> to vector<1x2x128xf32>
    %c0_11 = arith.constant 0 : index
    %c0_12 = arith.constant 0 : index
    %c0_13 = arith.constant 0 : index
    %24 = vector.load %arg5[%c0_11, %c0_12, %c0_13] : memref<1x2x128xf32, #tpu.memory_space<vmem>>, vector<1x2x128xf32>
    tpu.vector_store %arg5[%c0_11, %c0_12, %c0_13], %23 {strides = array<i32>} : memref<1x2x128xf32, #tpu.memory_space<vmem>>, vector<1x2x128xf32>,
    return
  }
  func.func @transform_0(%arg0: i32) -> (i32, i32) {
    %c0_i32 = arith.constant 0 : i32
    %c0_i32_0 = arith.constant 0 : i32
    return %arg0, %c0_i32 : i32, i32
  }
  func.func @transform_1(%arg0: i32) -> (i32, i32) {
    %c0_i32 = arith.constant 0 : i32
    %c0_i32_0 = arith.constant 0 : i32
    %c0_i32_1 = arith.constant 0 : i32
    return %c0_i32, %c0_i32_0 : i32, i32
  }
  func.func @transform_2(%arg0: i32) -> (i32, i32) {
    %c0_i32 = arith.constant 0 : i32
    %c0_i32_0 = arith.constant 0 : i32
    %c0_i32_1 = arith.constant 0 : i32
    return %c0_i32, %c0_i32_0 : i32, i32
  }
  func.func @transform_3(%arg0: i32) -> (i32, i32) {
    %c0_i32 = arith.constant 0 : i32
    %c0_i32_0 = arith.constant 0 : i32
    return %arg0, %c0_i32 : i32, i32
  }
  func.func @transform_4(%arg0: i32) -> (i32, i32, i32) {
    %c0_i32 = arith.constant 0 : i32
    %c0_i32_0 = arith.constant 0 : i32
    %c0_i32_1 = arith.constant 0 : i32
    return %arg0, %c0_i32, %c0_i32_0 : i32, i32, i32
  }
}

module attributes {stable_mosaic.version = 11 : i64} {
  func.func @kernel(%arg0: i32, %arg1: memref<128x72xbf16, #tpu.memory_space<vmem>>, %arg2: memref<72x128xbf16, #tpu.memory_space<vmem>>, %arg3: memref<1x128xf32, #tpu.memory_space<vmem>>, %arg4: memref<128x8xbf16, #tpu.memory_space<vmem>>, %arg5: memref<8x128xbf16, #tpu.memory_space<vmem>>, %arg6: memref<1x128xf32, #tpu.memory_space<vmem>>, %arg7: memref<128x128xf32, #tpu.memory_space<vmem>>, %arg8: memref<1x2x128xf32, #tpu.memory_space<vmem>>, %arg9: memref<128x128xf32, #tpu.memory_space<vmem>>, %arg10: memref<1x2x128xf32, #tpu.memory_space<vmem>>) attributes {dimension_semantics = [#tpu.dimension_semantics<parallel>], iteration_bounds = array<i64: 1>, scalar_prefetch = 0 : i64, scratch_operands = 0 : i64, tpu.core_type = #tpu.core_type<tc>, window_params = [{transform_indices = @transform_0, window_bounds = array<i64: 128, 72>}, {pipeline_mode = #tpu.pipeline_mode<synchronous>, transform_indices = @transform_1, window_bounds = array<i64: 72, 128>}, {pipeline_mode = #tpu.pipeline_mode<synchronous>, transform_indices = @transform_2, window_bounds = array<i64: 1, 128>}, {transform_indices = @transform_3, window_bounds = array<i64: 128, 8>}, {pipeline_mode = #tpu.pipeline_mode<synchronous>, transform_indices = @transform_4, window_bounds = array<i64: 8, 128>}, {pipeline_mode = #tpu.pipeline_mode<synchronous>, transform_indices = @transform_5, window_bounds = array<i64: 1, 128>}, {transform_indices = @transform_6, window_bounds = array<i64: 128, 128>}, {transform_indices = @transform_7, window_bounds = array<i64: 1, 2, 128>}, {transform_indices = @transform_8, window_bounds = array<i64: 128, 128>}, {transform_indices = @transform_9, window_bounds = array<i64: 1, 2, 128>}]} {
    %0 = tpu.iota {dimensions = array<i32: 0>} : vector<128x1xi32>
    %c128_i32 = arith.constant 128 : i32
    %1 = arith.muli %arg0, %c128_i32 : i32
    %2 = vector.broadcast %1 : i32 to vector<128x1xi32>
    %3 = arith.addi %0, %2 : vector<128x1xi32>
    %c128_i32_0 = arith.constant 128 : i32
    %4 = vector.broadcast %c128_i32_0 : i32 to vector<128x1xi32>
    %5 = arith.cmpi slt, %3, %4 : vector<128x1xi32>
    %c0 = arith.constant 0 : index
    %c0_1 = arith.constant 0 : index
    %6 = vector.load %arg1[%c0, %c0_1] : memref<128x72xbf16, #tpu.memory_space<vmem>>, vector<128x72xbf16>
    %c0_2 = arith.constant 0 : index
    %c0_3 = arith.constant 0 : index
    %7 = vector.load %arg2[%c0_2, %c0_3] : memref<72x128xbf16, #tpu.memory_space<vmem>>, vector<72x128xbf16>
    %cst = arith.constant dense<0.000000e+00> : vector<128x128xf32>
    %8 = tpu.matmul %6, %7, %cst {dimension_numbers = #tpu.dot_dimension_numbers<[1], [0], [0], [1], [0, 0, 1, 1], [], []>} : vector<128x72xbf16>, vector<72x128xbf16>, vector<128x128xf32> -> vector<128x128xf32>
    %c0_4 = arith.constant 0 : index
    %c0_5 = arith.constant 0 : index
    %9 = vector.load %arg3[%c0_4, %c0_5] : memref<1x128xf32, #tpu.memory_space<vmem>>, vector<1x128xf32>
    %10 = vector.broadcast %9 : vector<1x128xf32> to vector<128x128xf32>
    %11 = arith.addf %8, %10 : vector<128x128xf32>
    %c0_6 = arith.constant 0 : index
    %c0_7 = arith.constant 0 : index
    %12 = vector.load %arg7[%c0_6, %c0_7] : memref<128x128xf32, #tpu.memory_space<vmem>>, vector<128x128xf32>
    tpu.vector_store %arg7[%c0_6, %c0_7], %11 {strides = array<i32>} : memref<128x128xf32, #tpu.memory_space<vmem>>, vector<128x128xf32>,
    %cst_8 = arith.constant 0.000000e+00 : f32
    %13 = vector.shape_cast %5 : vector<128x1xi1> to vector<128x1xi1>
    %14 = vector.broadcast %13 : vector<128x1xi1> to vector<128x128xi1>
    %15 = vector.broadcast %cst_8 : f32 to vector<128x128xf32>
    %16 = arith.select %14, %11, %15 : vector<128x128xi1>, vector<128x128xf32>
    %cst_9 = arith.constant dense<0.000000e+00> : vector<128xf32>
    %17 = vector.multi_reduction <add>, %16, %cst_9 [0] : vector<128x128xf32> to vector<128xf32>
    %18 = vector.shape_cast %17 : vector<128xf32> to vector<1x128xf32>
    %19 = arith.mulf %16, %16 : vector<128x128xf32>
    %cst_10 = arith.constant dense<0.000000e+00> : vector<128xf32>
    %20 = vector.multi_reduction <add>, %19, %cst_10 [0] : vector<128x128xf32> to vector<128xf32>
    %21 = vector.shape_cast %20 : vector<128xf32> to vector<1x128xf32>
    %22 = tpu.concatenate %18, %21 in 0 : vector<1x128xf32>, vector<1x128xf32> -> vector<2x128xf32>
    %23 = vector.shape_cast %22 : vector<2x128xf32> to vector<1x2x128xf32>
    %c0_11 = arith.constant 0 : index
    %c0_12 = arith.constant 0 : index
    %c0_13 = arith.constant 0 : index
    %24 = vector.load %arg8[%c0_11, %c0_12, %c0_13] : memref<1x2x128xf32, #tpu.memory_space<vmem>>, vector<1x2x128xf32>
    tpu.vector_store %arg8[%c0_11, %c0_12, %c0_13], %23 {strides = array<i32>} : memref<1x2x128xf32, #tpu.memory_space<vmem>>, vector<1x2x128xf32>,
    %c0_14 = arith.constant 0 : index
    %c0_15 = arith.constant 0 : index
    %25 = vector.load %arg4[%c0_14, %c0_15] : memref<128x8xbf16, #tpu.memory_space<vmem>>, vector<128x8xbf16>
    %c0_16 = arith.constant 0 : index
    %c0_17 = arith.constant 0 : index
    %26 = vector.load %arg5[%c0_16, %c0_17] : memref<8x128xbf16, #tpu.memory_space<vmem>>, vector<8x128xbf16>
    %cst_18 = arith.constant dense<0.000000e+00> : vector<128x128xf32>
    %27 = tpu.matmul %25, %26, %cst_18 {dimension_numbers = #tpu.dot_dimension_numbers<[1], [0], [0], [1], [0, 0, 1, 1], [], []>} : vector<128x8xbf16>, vector<8x128xbf16>, vector<128x128xf32> -> vector<128x128xf32>
    %c0_19 = arith.constant 0 : index
    %c0_20 = arith.constant 0 : index
    %28 = vector.load %arg6[%c0_19, %c0_20] : memref<1x128xf32, #tpu.memory_space<vmem>>, vector<1x128xf32>
    %29 = vector.broadcast %28 : vector<1x128xf32> to vector<128x128xf32>
    %30 = arith.addf %27, %29 : vector<128x128xf32>
    %c0_21 = arith.constant 0 : index
    %c0_22 = arith.constant 0 : index
    %31 = vector.load %arg9[%c0_21, %c0_22] : memref<128x128xf32, #tpu.memory_space<vmem>>, vector<128x128xf32>
    tpu.vector_store %arg9[%c0_21, %c0_22], %30 {strides = array<i32>} : memref<128x128xf32, #tpu.memory_space<vmem>>, vector<128x128xf32>,
    %cst_23 = arith.constant 0.000000e+00 : f32
    %32 = vector.shape_cast %5 : vector<128x1xi1> to vector<128x1xi1>
    %33 = vector.broadcast %32 : vector<128x1xi1> to vector<128x128xi1>
    %34 = vector.broadcast %cst_23 : f32 to vector<128x128xf32>
    %35 = arith.select %33, %30, %34 : vector<128x128xi1>, vector<128x128xf32>
    %cst_24 = arith.constant dense<0.000000e+00> : vector<128xf32>
    %36 = vector.multi_reduction <add>, %35, %cst_24 [0] : vector<128x128xf32> to vector<128xf32>
    %37 = vector.shape_cast %36 : vector<128xf32> to vector<1x128xf32>
    %38 = arith.mulf %35, %35 : vector<128x128xf32>
    %cst_25 = arith.constant dense<0.000000e+00> : vector<128xf32>
    %39 = vector.multi_reduction <add>, %38, %cst_25 [0] : vector<128x128xf32> to vector<128xf32>
    %40 = vector.shape_cast %39 : vector<128xf32> to vector<1x128xf32>
    %41 = tpu.concatenate %37, %40 in 0 : vector<1x128xf32>, vector<1x128xf32> -> vector<2x128xf32>
    %42 = vector.shape_cast %41 : vector<2x128xf32> to vector<1x2x128xf32>
    %c0_26 = arith.constant 0 : index
    %c0_27 = arith.constant 0 : index
    %c0_28 = arith.constant 0 : index
    %43 = vector.load %arg10[%c0_26, %c0_27, %c0_28] : memref<1x2x128xf32, #tpu.memory_space<vmem>>, vector<1x2x128xf32>
    tpu.vector_store %arg10[%c0_26, %c0_27, %c0_28], %42 {strides = array<i32>} : memref<1x2x128xf32, #tpu.memory_space<vmem>>, vector<1x2x128xf32>,
    return
  }
  func.func @transform_0(%arg0: i32) -> (i32, i32) {
    %c0_i32 = arith.constant 0 : i32
    %c0_i32_0 = arith.constant 0 : i32
    return %arg0, %c0_i32 : i32, i32
  }
  func.func @transform_1(%arg0: i32) -> (i32, i32) {
    %c0_i32 = arith.constant 0 : i32
    %c0_i32_0 = arith.constant 0 : i32
    %c0_i32_1 = arith.constant 0 : i32
    return %c0_i32, %c0_i32_0 : i32, i32
  }
  func.func @transform_2(%arg0: i32) -> (i32, i32) {
    %c0_i32 = arith.constant 0 : i32
    %c0_i32_0 = arith.constant 0 : i32
    %c0_i32_1 = arith.constant 0 : i32
    return %c0_i32, %c0_i32_0 : i32, i32
  }
  func.func @transform_3(%arg0: i32) -> (i32, i32) {
    %c0_i32 = arith.constant 0 : i32
    %c0_i32_0 = arith.constant 0 : i32
    return %arg0, %c0_i32 : i32, i32
  }
  func.func @transform_4(%arg0: i32) -> (i32, i32) {
    %c0_i32 = arith.constant 0 : i32
    %c0_i32_0 = arith.constant 0 : i32
    %c0_i32_1 = arith.constant 0 : i32
    return %c0_i32, %c0_i32_0 : i32, i32
  }
  func.func @transform_5(%arg0: i32) -> (i32, i32) {
    %c0_i32 = arith.constant 0 : i32
    %c0_i32_0 = arith.constant 0 : i32
    %c0_i32_1 = arith.constant 0 : i32
    return %c0_i32, %c0_i32_0 : i32, i32
  }
  func.func @transform_6(%arg0: i32) -> (i32, i32) {
    %c0_i32 = arith.constant 0 : i32
    %c0_i32_0 = arith.constant 0 : i32
    return %arg0, %c0_i32 : i32, i32
  }
  func.func @transform_7(%arg0: i32) -> (i32, i32, i32) {
    %c0_i32 = arith.constant 0 : i32
    %c0_i32_0 = arith.constant 0 : i32
    %c0_i32_1 = arith.constant 0 : i32
    return %arg0, %c0_i32, %c0_i32_0 : i32, i32, i32
  }
  func.func @transform_8(%arg0: i32) -> (i32, i32) {
    %c0_i32 = arith.constant 0 : i32
    %c0_i32_0 = arith.constant 0 : i32
    return %arg0, %c0_i32 : i32, i32
  }
  func.func @transform_9(%arg0: i32) -> (i32, i32, i32) {
    %c0_i32 = arith.constant 0 : i32
    %c0_i32_0 = arith.constant 0 : i32
    %c0_i32_1 = arith.constant 0 : i32
    return %arg0, %c0_i32, %c0_i32_0 : i32, i32, i32
  }
}

module attributes {stable_mosaic.version = 11 : i64} {
  func.func @kernel(%arg0: i32, %arg1: memref<128x128xf32, #tpu.memory_space<vmem>>, %arg2: memref<1x128xf32, #tpu.memory_space<vmem>>, %arg3: memref<1x128xf32, #tpu.memory_space<vmem>>, %arg4: memref<128x128xf32, #tpu.memory_space<vmem>>, %arg5: memref<1x128xf32, #tpu.memory_space<vmem>>, %arg6: memref<1x128xf32, #tpu.memory_space<vmem>>, %arg7: memref<128x128xf32, #tpu.memory_space<vmem>>) attributes {dimension_semantics = [#tpu.dimension_semantics<parallel>], iteration_bounds = array<i64: 1>, scalar_prefetch = 0 : i64, scratch_operands = 0 : i64, tpu.core_type = #tpu.core_type<tc>, window_params = [{transform_indices = @transform_0, window_bounds = array<i64: 128, 128>}, {pipeline_mode = #tpu.pipeline_mode<synchronous>, transform_indices = @transform_1, window_bounds = array<i64: 1, 128>}, {pipeline_mode = #tpu.pipeline_mode<synchronous>, transform_indices = @transform_2, window_bounds = array<i64: 1, 128>}, {transform_indices = @transform_3, window_bounds = array<i64: 128, 128>}, {pipeline_mode = #tpu.pipeline_mode<synchronous>, transform_indices = @transform_4, window_bounds = array<i64: 1, 128>}, {pipeline_mode = #tpu.pipeline_mode<synchronous>, transform_indices = @transform_5, window_bounds = array<i64: 1, 128>}, {transform_indices = @transform_6, window_bounds = array<i64: 128, 128>}]} {
    %c0 = arith.constant 0 : index
    %c0_0 = arith.constant 0 : index
    %0 = vector.load %arg1[%c0, %c0_0] : memref<128x128xf32, #tpu.memory_space<vmem>>, vector<128x128xf32>
    %c0_1 = arith.constant 0 : index
    %c0_2 = arith.constant 0 : index
    %1 = vector.load %arg2[%c0_1, %c0_2] : memref<1x128xf32, #tpu.memory_space<vmem>>, vector<1x128xf32>
    %c0_3 = arith.constant 0 : index
    %c0_4 = arith.constant 0 : index
    %2 = vector.load %arg3[%c0_3, %c0_4] : memref<1x128xf32, #tpu.memory_space<vmem>>, vector<1x128xf32>
    %3 = vector.broadcast %1 : vector<1x128xf32> to vector<128x128xf32>
    %4 = arith.mulf %0, %3 : vector<128x128xf32>
    %5 = vector.broadcast %2 : vector<1x128xf32> to vector<128x128xf32>
    %6 = arith.addf %4, %5 : vector<128x128xf32>
    %c0_5 = arith.constant 0 : index
    %c0_6 = arith.constant 0 : index
    %7 = vector.load %arg4[%c0_5, %c0_6] : memref<128x128xf32, #tpu.memory_space<vmem>>, vector<128x128xf32>
    %c0_7 = arith.constant 0 : index
    %c0_8 = arith.constant 0 : index
    %8 = vector.load %arg5[%c0_7, %c0_8] : memref<1x128xf32, #tpu.memory_space<vmem>>, vector<1x128xf32>
    %c0_9 = arith.constant 0 : index
    %c0_10 = arith.constant 0 : index
    %9 = vector.load %arg6[%c0_9, %c0_10] : memref<1x128xf32, #tpu.memory_space<vmem>>, vector<1x128xf32>
    %10 = vector.broadcast %8 : vector<1x128xf32> to vector<128x128xf32>
    %11 = arith.mulf %7, %10 : vector<128x128xf32>
    %12 = vector.broadcast %9 : vector<1x128xf32> to vector<128x128xf32>
    %13 = arith.addf %11, %12 : vector<128x128xf32>
    %14 = arith.addf %6, %13 : vector<128x128xf32>
    %cst = arith.constant 0.000000e+00 : f32
    %15 = vector.broadcast %cst : f32 to vector<128x128xf32>
    %16 = arith.maximumf %14, %15 : vector<128x128xf32>
    %c0_11 = arith.constant 0 : index
    %c0_12 = arith.constant 0 : index
    %17 = vector.load %arg7[%c0_11, %c0_12] : memref<128x128xf32, #tpu.memory_space<vmem>>, vector<128x128xf32>
    tpu.vector_store %arg7[%c0_11, %c0_12], %16 {strides = array<i32>} : memref<128x128xf32, #tpu.memory_space<vmem>>, vector<128x128xf32>,
    return
  }
  func.func @transform_0(%arg0: i32) -> (i32, i32) {
    %c0_i32 = arith.constant 0 : i32
    %c0_i32_0 = arith.constant 0 : i32
    return %arg0, %c0_i32 : i32, i32
  }
  func.func @transform_1(%arg0: i32) -> (i32, i32) {
    %c0_i32 = arith.constant 0 : i32
    %c0_i32_0 = arith.constant 0 : i32
    %c0_i32_1 = arith.constant 0 : i32
    return %c0_i32, %c0_i32_0 : i32, i32
  }
  func.func @transform_2(%arg0: i32) -> (i32, i32) {
    %c0_i32 = arith.constant 0 : i32
    %c0_i32_0 = arith.constant 0 : i32
    %c0_i32_1 = arith.constant 0 : i32
    return %c0_i32, %c0_i32_0 : i32, i32
  }
  func.func @transform_3(%arg0: i32) -> (i32, i32) {
    %c0_i32 = arith.constant 0 : i32
    %c0_i32_0 = arith.constant 0 : i32
    return %arg0, %c0_i32 : i32, i32
  }
  func.func @transform_4(%arg0: i32) -> (i32, i32) {
    %c0_i32 = arith.constant 0 : i32
    %c0_i32_0 = arith.constant 0 : i32
    %c0_i32_1 = arith.constant 0 : i32
    return %c0_i32, %c0_i32_0 : i32, i32
  }
  func.func @transform_5(%arg0: i32) -> (i32, i32) {
    %c0_i32 = arith.constant 0 : i32
    %c0_i32_0 = arith.constant 0 : i32
    %c0_i32_1 = arith.constant 0 : i32
    return %c0_i32, %c0_i32_0 : i32, i32
  }
  func.func @transform_6(%arg0: i32) -> (i32, i32) {
    %c0_i32 = arith.constant 0 : i32
    %c0_i32_0 = arith.constant 0 : i32
    return %arg0, %c0_i32 : i32, i32
  }
}

</mosaic_0001>

<bundles_post_ra>
// kernel: residual_block_forward.3
= control target key start
LH: loop header
LB: loop body
LE: loop exit
PB: predicated region body
PF: predicated region fallthrough
CT: control target
= control target key end

     0   :  { %vm151_vm0 = vcmask 326656   ;;  %vm176_vm1 = vcmask 1043456   ;;  %vm399_vm2 = vcmask 1040384   ;;  %s614_s1 = inlined_call_operand.vmem [shape: bf16[40,128], index: 1, kind: input, shape index: {}]   ;;  %s615_s0 = inlined_call_operand.vmem [shape: bf16[128,40], index: 0, kind: input, shape index: {}]   ;;  %s616_s2 = inlined_call_operand.vmem [shape: f32[1,128], index: 2, kind: input, shape index: {}]   ;;  %s617_s3 = inlined_call_operand.vmem [shape: f32[128,128], index: 3, kind: output, shape index: {0}]   ;;  %s618_s4 = inlined_call_operand.vmem [shape: f32[1,2,128], index: 4, kind: output, shape index: {1}]  }
   0x1   :  { %v471_v0 = vld [vmem:[%s614_s1] sm:$0xff]   ;;  %v472_v1 = vld [vmem:[%s614_s1 + $0x8] sm:$0xff]   ;;  %v473_v3 = vld [vmem:[%s614_s1 + $0x10] ss:$0 sps:$4 sm:$0xff]  }
   0x2   :  { %441 = vmatprep.subr.bf16.mxu0 %v471_v0  ;;  %463 = vmatprep.subr.bf16.mxu1 %v471_v0  ;;  %v474_v2 = vld [vmem:[%s615_s0] sm:$0xff]   ;;  %v178_v5 = vsel %vm176_vm1, %v473_v3, 0  ;;  %v475_v6 = vld [vmem:[%s615_s0 + $0x8] sm:$0xff]   ;;  %v476_v8 = vld [vmem:[%s615_s0 + $0x10] sm:$0xff]  }
   0x3   :  { %442 = vmatpush3.bf16.msra.mxu0 %v471_v0  ;;  %466 = vmatpush3.bf16.msra.mxu1 %v471_v0  ;;  %v478_v4 = vld [vmem:[%s615_s0 + $0x20] sm:$0xff]   ;;  %v479_v7 = vld [vmem:[%s615_s0 + $0x28] sm:$0xff]   ;;  %v480_v9 = vld [vmem:[%s615_s0 + $0x30] sm:$0xff]  }
   0x4   :  { %443 = vmatprep.subr.bf16.mxu0 %v472_v1  ;;  %464 = vmatprep.subr.bf16.mxu1 %v472_v1  ;;  %v477_v10 = vld [vmem:[%s615_s0 + $0x18] sm:$0xff]   ;;  %v410_v12 = vld [vmem:[%s616_s2] ss:$0 sm:$0xff] }
   0x5   :  { %447 = vmatprep.mubr.msk.bf16.mxu0 %vm151_vm0, %v474_v2  ;;  %455 = vmatprep.mubr.msk.bf16.mxu1 %vm151_vm0, %v478_v4  ;;  %v481_v11 = vld [vmem:[%s615_s0 + $0x38] sm:$0xff]  }
   0x7   :  { %444 = vmatpush3.bf16.msra.mxu0 %v472_v1  ;;  %467 = vmatpush3.bf16.msra.mxu1 %v472_v1 }
   0x8   :  { %469 = vmatprep.subr.msk.bf16.mxu0 %vm176_vm1, %v473_v3  ;;  %470 = vmatprep.subr.msk.bf16.mxu1 %vm176_vm1, %v473_v3 }
   0xb   :  { %446 = vmatpush3.bf16.msra.mxu0 %v178_v5  ;;  %468 = vmatpush3.bf16.msra.mxu1 %v178_v5 }
   0xe   :  { %448 = vmatmul.mubr.msk.bf16.vlgmr.msra.gmra.mrb[0].mxu0 %vm151_vm0, %v475_v6  ;;  %456 = vmatmul.mubr.msk.bf16.vlgmr.msra.gmra.mrb[0].mxu1 %vm151_vm0, %v479_v7 }
   0xf   :  { %451 = vmatprep.mubr.msk.bf16.mxu0 %vm151_vm0, %v476_v8  ;;  %459 = vmatprep.mubr.msk.bf16.mxu1 %vm151_vm0, %v480_v9 }
  0x16   :  { %452 = vmatmul.mubr.msk.bf16.gmra.mrb[4].mxu0 %vm151_vm0, %v477_v10  ;;  %460 = vmatmul.mubr.msk.bf16.gmra.mrb[4].mxu1 %vm151_vm0, %v481_v11 }
  0xe1   :  { %v449_v13 = vpop.f32.mrb[0].mxu0  ;;  %v457_v14 = vpop.f32.mrb[0].mxu1 }
  0xe2   :  { %v223_v15 = vadd.f32 %v449_v13, %v410_v12  ;;  %v214_v16 = vpop.f32.mrb[1].mxu0  ;;  %v551_v17 = vadd.f32 %v457_v14, %v410_v12  ;;  %v246_v18 = vpop.f32.mrb[1].mxu1 }
  0xe3   :  { %v215_v19 = vadd.f32 %v410_v12, %v214_v16  ;;  %v450_v20 = vpop.f32.mrb[2].mxu0  ;;  %v247_v21 = vadd.f32 %v410_v12, %v246_v18  ;;  %v458_v22 = vpop.f32.mrb[2].mxu1 }
  0xe4   :  { %279 = vst [vmem:[%s617_s3 + $0x10] sm:$0xff] %v223_v15  ;;  %v226_v23 = vadd.f32 %v450_v20, %v410_v12  ;;  %v217_v24 = vpop.f32.mrb[3].mxu0  ;;  %287 = vst [vmem:[%s617_s3 + $0x50] sm:$0xff] %v551_v17  ;;  %v560_v25 = vadd.f32 %v458_v22, %v410_v12  ;;  %v249_v26 = vpop.f32.mrb[3].mxu1  ;;  %v364_v32 = vmul.f32 %v223_v15, %v223_v15 }
  0xe5   :  { %277 = vst [vmem:[%s617_s3] sm:$0xff] %v215_v19  ;;  %v218_v27 = vadd.f32 %v410_v12, %v217_v24  ;;  %285 = vst [vmem:[%s617_s3 + $0x40] sm:$0xff] %v247_v21  ;;  %v250_v28 = vadd.f32 %v410_v12, %v249_v26  ;;  %v362_v29 = vmul.f32 %v215_v19, %v215_v19 }
  0xe6   :  { %280 = vst [vmem:[%s617_s3 + $0x18] sm:$0xff] %v226_v23  ;;  %288 = vst [vmem:[%s617_s3 + $0x58] sm:$0xff] %v560_v25  ;;  %v365_v37 = vmul.f32 %v226_v23, %v226_v23  ;;  %v370_v2 = vmul.f32 %v247_v21, %v247_v21  ;;  %v372_v8 = vmul.f32 %v551_v17, %v551_v17 }
  0xe7   :  { %278 = vst [vmem:[%s617_s3 + $0x8] sm:$0xff] %v218_v27  ;;  %v341_v30 = vadd.f32 %v218_v27, %v215_v19  ;;  %v363_v31 = vmul.f32 %v218_v27, %v218_v27  ;;  %286 = vst [vmem:[%s617_s3 + $0x48] sm:$0xff] %v250_v28  ;;  %v371_v7 = vmul.f32 %v250_v28, %v250_v28 }
  0xe8   :  { %v373_v11 = vmul.f32 %v560_v25, %v560_v25 }
  0xe9   :  { %v342_v33 = vadd.f32 %v341_v30, %v223_v15  ;;  %v378_v34 = vadd.f32 %v363_v31, %v362_v29  ;;  %v453_v35 = vpop.f32.mrb[4].mxu0  ;;  %v461_v36 = vpop.f32.mrb[4].mxu1 }
  0xea   :  { %v239_v38 = vadd.f32 %v453_v35, %v410_v12  ;;  %v230_v39 = vpop.f32.mrb[5].mxu0  ;;  %v271_v40 = vadd.f32 %v461_v36, %v410_v12  ;;  %v262_v41 = vpop.f32.mrb[5].mxu1 }
  0xeb   :  { %v379_v42 = vadd.f32 %v378_v34, %v364_v32  ;;  %v231_v43 = vadd.f32 %v410_v12, %v230_v39  ;;  %v343_v44 = vadd.f32 %v342_v33, %v226_v23  ;;  %v454_v45 = vpop.f32.mrb[6].mxu0  ;;  %v263_v46 = vadd.f32 %v410_v12, %v262_v41  ;;  %v462_v47 = vpop.f32.mrb[6].mxu1 }
  0xec   :  { %283 = vst [vmem:[%s617_s3 + $0x30] sm:$0xff] %v239_v38  ;;  %v242_v48 = vadd.f32 %v454_v45, %v410_v12  ;;  %v233_v49 = vpop.f32.mrb[7].mxu0  ;;  %291 = vst [vmem:[%s617_s3 + $0x70] sm:$0xff] %v271_v40  ;;  %v274_v50 = vadd.f32 %v462_v47, %v410_v12  ;;  %v265_v51 = vpop.f32.mrb[7].mxu1  ;;  %v368_v60 = vmul.f32 %v239_v38, %v239_v38 }
  0xed   :  { %281 = vst [vmem:[%s617_s3 + $0x20] sm:$0xff] %v231_v43  ;;  %v344_v52 = vadd.f32 %v343_v44, %v231_v43  ;;  %v366_v53 = vmul.f32 %v231_v43, %v231_v43  ;;  %v380_v54 = vadd.f32 %v379_v42, %v365_v37  ;;  %v234_v55 = vadd.f32 %v410_v12, %v233_v49 }
  0xee   :  { %289 = vst [vmem:[%s617_s3 + $0x60] sm:$0xff] %v263_v46  ;;  %284 = vst [vmem:[%s617_s3 + $0x38] sm:$0xff] %v242_v48  ;;  %v266_v56 = vadd.f32 %v410_v12, %v265_v51  ;;  %v369_v63 = vmul.f32 %v242_v48, %v242_v48  ;;  %v374_v14 = vmul.f32 %v263_v46, %v263_v46 }
  0xef   :  { %292 = vst [vmem:[%s617_s3 + $0x78] sm:$0xff] %v274_v50  ;;  %v381_v57 = vadd.f32 %v380_v54, %v366_v53  ;;  %282 = vst [vmem:[%s617_s3 + $0x28] sm:$0xff] %v234_v55  ;;  %v345_v58 = vadd.f32 %v344_v52, %v234_v55  ;;  %v367_v59 = vmul.f32 %v234_v55, %v234_v55 }
  0xf0   :  { %290 = vst [vmem:[%s617_s3 + $0x68] sm:$0xff] %v266_v56  ;;  %v375_v20 = vmul.f32 %v266_v56, %v266_v56  ;;  %v377_v24 = vmul.f32 %v274_v50, %v274_v50 }
  0xf1   :  { %v346_v61 = vadd.f32 %v345_v58, %v239_v38  ;;  %v382_v62 = vadd.f32 %v381_v57, %v367_v59 }
  0xf3   :  { %v383_v0 = vadd.f32 %v382_v62, %v368_v60  ;;  %v347_v1 = vadd.f32 %v346_v61, %v242_v48 }
  0xf5   :  { %v348_v3 = vadd.f32 %v347_v1, %v247_v21  ;;  %v384_v4 = vadd.f32 %v383_v0, %v369_v63  ;;  %v376_v21 = vmul.f32 %v271_v40, %v271_v40 }
  0xf7   :  { %v385_v5 = vadd.f32 %v384_v4, %v370_v2  ;;  %v349_v6 = vadd.f32 %v348_v3, %v250_v28 }
  0xf9   :  { %v350_v9 = vadd.f32 %v349_v6, %v551_v17  ;;  %v386_v10 = vadd.f32 %v385_v5, %v371_v7 }
  0xfb   :  { %v387_v12 = vadd.f32 %v386_v10, %v372_v8  ;;  %v351_v13 = vadd.f32 %v350_v9, %v560_v25 }
  0xfd   :  { %v352_v15 = vadd.f32 %v351_v13, %v263_v46  ;;  %v388_v16 = vadd.f32 %v387_v12, %v373_v11 }
  0xff   :  { %v389_v18 = vadd.f32 %v388_v16, %v374_v14  ;;  %v353_v19 = vadd.f32 %v352_v15, %v266_v56 }
 0x101   :  { %v354_v22 = vadd.f32 %v353_v19, %v271_v40  ;;  %v390_v23 = vadd.f32 %v389_v18, %v375_v20 }
 0x103   :  { %v355_v26 = vadd.f32 %v354_v22, %v274_v50  ;;  %v391_v27 = vadd.f32 %v390_v23, %v376_v21 }
 0x105   :  { %v356_v17 = vrot.slane %v355_v26, 4  ;;  %v392_v28 = vadd.f32 %v391_v27, %v377_v24 }
 0x107   :  { %v357_v29 = vadd.f32 %v356_v17, %v355_v26  ;;  %v393_v30 = vrot.slane %v392_v28, 4 }
 0x109   :  { %v358_v31 = vrot.slane %v357_v29, 2  ;;  %v394_v32 = vadd.f32 %v393_v30, %v392_v28 }
 0x10b   :  { %v359_v33 = vadd.f32 %v358_v31, %v357_v29  ;;  %v395_v25 = vrot.slane %v394_v32, 2 }
 0x10d   :  { %v360_v34 = vrot.slane %v359_v33, 1  ;;  %v396_v35 = vadd.f32 %v395_v25, %v394_v32 }
 0x10f   :  { %v397_v36 = vrot.slane %v396_v35, 1  ;;  %v361_v37 = vadd.f32 %v360_v34, %v359_v33 }
 0x111   :  { %v398_v38 = vadd.f32 %v397_v36, %v396_v35 }
 0x113   :  { %v400_v39 = vsel %vm399_vm2, %v361_v37, %v398_v38 }
 0x114   :  { %401 = vst [vmem:[%s618_s4] sm:$0x3] %v400_v39 }

// kernel: residual_block_forward.5
= control target key start
LH: loop header
LB: loop body
LE: loop exit
PB: predicated region body
PF: predicated region fallthrough
CT: control target
= control target key end

     0   :  { %s466_s0 = inlined_call_operand.vmem [shape: f32[128,128], index: 0, kind: input, shape index: {}]   ;;  %s467_s1 = inlined_call_operand.vmem [shape: f32[1,128], index: 1, kind: input, shape index: {}]   ;;  %s468_s2 = inlined_call_operand.vmem [shape: f32[1,128], index: 2, kind: input, shape index: {}]   ;;  %s469_s3 = inlined_call_operand.vmem [shape: f32[128,128], index: 3, kind: input, shape index: {}]   ;;  %s470_s4 = inlined_call_operand.vmem [shape: f32[1,128], index: 4, kind: input, shape index: {}]   ;;  %s471_s5 = inlined_call_operand.vmem [shape: f32[1,128], index: 5, kind: input, shape index: {}]   ;;  %s472_s6 = inlined_call_operand.vmem [shape: f32[128,128], index: 6, kind: output, shape index: {}]  }
   0x1   :  { %v23_v0 = vld [vmem:[%s466_s0] sm:$0xff]  ;;  %v24_v8 = vld [vmem:[%s466_s0 + $0x8] sm:$0xff]  ;;  %v25_v10 = vld [vmem:[%s466_s0 + $0x10] sm:$0xff] }
   0x2   :  { %v244_v1 = vld [vmem:[%s467_s1] ss:$0 sm:$0xff]  ;;  %v86_v9 = vld [vmem:[%s469_s3 + $0x8] sm:$0xff]  ;;  %v87_v15 = vld [vmem:[%s469_s3 + $0x10] sm:$0xff] }
   0x3   :  { %v249_v2 = vld [vmem:[%s468_s2] ss:$0 sm:$0xff]  ;;  %v47_v3 = vmul.f32 %v244_v1, %v23_v0  ;;  %v48_v12 = vmul.f32 %v244_v1, %v24_v8  ;;  %v49_v14 = vmul.f32 %v244_v1, %v25_v10  ;;  %v26_v16 = vld [vmem:[%s466_s0 + $0x18] sm:$0xff]  ;;  %v28_v24 = vld [vmem:[%s466_s0 + $0x28] sm:$0xff] }
   0x4   :  { %v85_v4 = vld [vmem:[%s469_s3] sm:$0xff]  ;;  %v88_v17 = vld [vmem:[%s469_s3 + $0x18] sm:$0xff]  ;;  %v50_v20 = vmul.f32 %v244_v1, %v26_v16  ;;  %v90_v29 = vld [vmem:[%s469_s3 + $0x28] sm:$0xff]  ;;  %v52_v38 = vmul.f32 %v244_v1, %v28_v24 }
   0x5   :  { %v258_v5 = vld [vmem:[%s470_s4] ss:$0 sm:$0xff]  ;;  %v69_v11 = vadd.f32 %v249_v2, %v47_v3  ;;  %v70_v25 = vadd.f32 %v249_v2, %v48_v12  ;;  %v71_v27 = vadd.f32 %v249_v2, %v49_v14  ;;  %v29_v34 = vld [vmem:[%s466_s0 + $0x30] sm:$0xff]  ;;  %v30_v44 = vld [vmem:[%s466_s0 + $0x38] sm:$0xff] }
   0x6   :  { %v263_v6 = vld [vmem:[%s471_s5] ss:$0 sm:$0xff]  ;;  %v109_v7 = vmul.f32 %v258_v5, %v85_v4  ;;  %v110_v13 = vmul.f32 %v258_v5, %v86_v9  ;;  %v111_v19 = vmul.f32 %v258_v5, %v87_v15  ;;  %v112_v21 = vmul.f32 %v258_v5, %v88_v17  ;;  %v91_v39 = vld [vmem:[%s469_s3 + $0x30] sm:$0xff]  ;;  %v92_v45 = vld [vmem:[%s469_s3 + $0x38] sm:$0xff] }
   0x7   :  { %v27_v22 = vld [vmem:[%s466_s0 + $0x20] sm:$0xff]  ;;  %v72_v32 = vadd.f32 %v249_v2, %v50_v20  ;;  %v114_v43 = vmul.f32 %v258_v5, %v90_v29  ;;  %v74_v48 = vadd.f32 %v249_v2, %v52_v38  ;;  %v53_v49 = vmul.f32 %v244_v1, %v29_v34  ;;  %v32_v56 = vld [vmem:[%s466_s0 + $0x48] sm:$0xff]  ;;  %v33_v4 = vld [vmem:[%s466_s0 + $0x50] sm:$0xff] }
   0x8   :  { %v131_v18 = vadd.f32 %v263_v6, %v109_v7  ;;  %v89_v23 = vld [vmem:[%s469_s3 + $0x20] sm:$0xff]  ;;  %v132_v26 = vadd.f32 %v263_v6, %v110_v13  ;;  %v51_v28 = vmul.f32 %v244_v1, %v27_v22  ;;  %v133_v31 = vadd.f32 %v263_v6, %v111_v19  ;;  %v94_v3 = vld [vmem:[%s469_s3 + $0x48] sm:$0xff]  ;;  %v34_v12 = vld [vmem:[%s466_s0 + $0x58] sm:$0xff] }
   0x9   :  { %v134_v33 = vadd.f32 %v263_v6, %v112_v21  ;;  %v113_v37 = vmul.f32 %v258_v5, %v89_v23  ;;  %v31_v50 = vld [vmem:[%s466_s0 + $0x40] sm:$0xff]  ;;  %v136_v54 = vadd.f32 %v263_v6, %v114_v43  ;;  %v115_v55 = vmul.f32 %v258_v5, %v91_v39  ;;  %v96_v17 = vld [vmem:[%s469_s3 + $0x58] sm:$0xff]  ;;  %v37_v34 = vld [vmem:[%s466_s0 + $0x70] sm:$0xff] }
   0xa   :  { %v147_v30 = vadd.f32 %v131_v18, %v69_v11  ;;  %v148_v35 = vadd.f32 %v132_v26, %v70_v25  ;;  %v73_v36 = vadd.f32 %v249_v2, %v51_v28  ;;  %v149_v41 = vadd.f32 %v133_v31, %v71_v27  ;;  %v93_v51 = vld [vmem:[%s469_s3 + $0x40] sm:$0xff]  ;;  %v95_v11 = vld [vmem:[%s469_s3 + $0x50] sm:$0xff]  ;;  %v36_v28 = vld [vmem:[%s466_s0 + $0x68] sm:$0xff] }
   0xb   :  { %v150_v42 = vadd.f32 %v134_v33, %v72_v32  ;;  %v135_v47 = vadd.f32 %v263_v6, %v113_v37  ;;  %v75_v58 = vadd.f32 %v249_v2, %v53_v49  ;;  %v54_v59 = vmul.f32 %v244_v1, %v30_v44  ;;  %v35_v22 = vld [vmem:[%s466_s0 + $0x60] sm:$0xff]  ;;  %v98_v33 = vld [vmem:[%s469_s3 + $0x68] sm:$0xff]  ;;  %v99_v43 = vld [vmem:[%s469_s3 + $0x70] sm:$0xff] }
   0xc   :  { %v163_v40 = vmax.f32 %v147_v30, 0.0  ;;  %v164_v46 = vmax.f32 %v148_v35, 0.0  ;;  %v165_v52 = vmax.f32 %v149_v41, 0.0  ;;  %v116_v60 = vmul.f32 %v258_v5, %v92_v45  ;;  %v97_v27 = vld [vmem:[%s469_s3 + $0x60] sm:$0xff]  ;;  %v100_v49 = vld [vmem:[%s469_s3 + $0x78] sm:$0xff] }
   0xd   :  { %v166_v53 = vmax.f32 %v150_v42, 0.0  ;;  %v151_v57 = vadd.f32 %v135_v47, %v73_v36  ;;  %v152_v61 = vadd.f32 %v136_v54, %v74_v48  ;;  %v137_v62 = vadd.f32 %v263_v6, %v115_v55  ;;  %v38_v48 = vld [vmem:[%s466_s0 + $0x78] sm:$0xff] }
   0xe   :  { %179 = vst [vmem:[%s472_s6] sm:$0xff] %v163_v40  ;;  %180 = vst [vmem:[%s472_s6 + $0x8] sm:$0xff] %v164_v46  ;;  %v55_v63 = vmul.f32 %v244_v1, %v31_v50  ;;  %v117_v0 = vmul.f32 %v258_v5, %v93_v51  ;;  %v76_v8 = vadd.f32 %v249_v2, %v54_v59 }
   0xf   :  { %181 = vst [vmem:[%s472_s6 + $0x10] sm:$0xff] %v165_v52  ;;  %182 = vst [vmem:[%s472_s6 + $0x18] sm:$0xff] %v166_v53  ;;  %v167_v7 = vmax.f32 %v151_v57, 0.0  ;;  %v138_v9 = vadd.f32 %v263_v6, %v116_v60  ;;  %v56_v10 = vmul.f32 %v244_v1, %v32_v56  ;;  %v168_v13 = vmax.f32 %v152_v61, 0.0 }
  0x10   :  { %v153_v14 = vadd.f32 %v137_v62, %v75_v58  ;;  %v77_v15 = vadd.f32 %v249_v2, %v55_v63  ;;  %v139_v16 = vadd.f32 %v263_v6, %v117_v0  ;;  %v118_v20 = vmul.f32 %v258_v5, %v94_v3 }
  0x11   :  { %183 = vst [vmem:[%s472_s6 + $0x20] sm:$0xff] %v167_v7  ;;  %v154_v18 = vadd.f32 %v138_v9, %v76_v8  ;;  %v78_v19 = vadd.f32 %v249_v2, %v56_v10  ;;  %v57_v21 = vmul.f32 %v244_v1, %v33_v4  ;;  %184 = vst [vmem:[%s472_s6 + $0x28] sm:$0xff] %v168_v13 }
  0x12   :  { %v169_v23 = vmax.f32 %v153_v14, 0.0  ;;  %v155_v24 = vadd.f32 %v139_v16, %v77_v15  ;;  %v119_v25 = vmul.f32 %v258_v5, %v95_v11  ;;  %v58_v26 = vmul.f32 %v244_v1, %v34_v12 }
  0x13   :  { %v170_v29 = vmax.f32 %v154_v18, 0.0  ;;  %v140_v30 = vadd.f32 %v263_v6, %v118_v20  ;;  %v79_v31 = vadd.f32 %v249_v2, %v57_v21  ;;  %v120_v32 = vmul.f32 %v258_v5, %v96_v17 }
  0x14   :  { %185 = vst [vmem:[%s472_s6 + $0x30] sm:$0xff] %v169_v23  ;;  %v171_v35 = vmax.f32 %v155_v24, 0.0  ;;  %v141_v36 = vadd.f32 %v263_v6, %v119_v25  ;;  %v80_v37 = vadd.f32 %v249_v2, %v58_v26  ;;  %v59_v38 = vmul.f32 %v244_v1, %v35_v22 }
  0x15   :  { %186 = vst [vmem:[%s472_s6 + $0x38] sm:$0xff] %v170_v29  ;;  %v156_v39 = vadd.f32 %v140_v30, %v78_v19  ;;  %v142_v40 = vadd.f32 %v263_v6, %v120_v32  ;;  %v121_v41 = vmul.f32 %v258_v5, %v97_v27  ;;  %v60_v42 = vmul.f32 %v244_v1, %v36_v28 }
  0x16   :  { %187 = vst [vmem:[%s472_s6 + $0x40] sm:$0xff] %v171_v35  ;;  %v157_v44 = vadd.f32 %v141_v36, %v79_v31  ;;  %v81_v45 = vadd.f32 %v249_v2, %v59_v38  ;;  %v122_v46 = vmul.f32 %v258_v5, %v98_v33  ;;  %v61_v47 = vmul.f32 %v244_v1, %v37_v34 }
  0x17   :  { %v172_v50 = vmax.f32 %v156_v39, 0.0  ;;  %v158_v51 = vadd.f32 %v142_v40, %v80_v37  ;;  %v143_v52 = vadd.f32 %v263_v6, %v121_v41  ;;  %v82_v53 = vadd.f32 %v249_v2, %v60_v42 }
  0x18   :  { %v173_v54 = vmax.f32 %v157_v44, 0.0  ;;  %v144_v55 = vadd.f32 %v263_v6, %v122_v46  ;;  %v83_v56 = vadd.f32 %v249_v2, %v61_v47  ;;  %v123_v57 = vmul.f32 %v258_v5, %v99_v43 }
  0x19   :  { %188 = vst [vmem:[%s472_s6 + $0x48] sm:$0xff] %v172_v50  ;;  %v174_v58 = vmax.f32 %v158_v51, 0.0  ;;  %v159_v59 = vadd.f32 %v143_v52, %v81_v45  ;;  %v62_v60 = vmul.f32 %v244_v1, %v38_v48  ;;  %v124_v61 = vmul.f32 %v258_v5, %v100_v49 }
  0x1a   :  { %189 = vst [vmem:[%s472_s6 + $0x50] sm:$0xff] %v173_v54  ;;  %v160_v62 = vadd.f32 %v144_v55, %v82_v53  ;;  %v145_v63 = vadd.f32 %v263_v6, %v123_v57 }
  0x1b   :  { %190 = vst [vmem:[%s472_s6 + $0x58] sm:$0xff] %v174_v58  ;;  %v175_v0 = vmax.f32 %v159_v59, 0.0  ;;  %v84_v3 = vadd.f32 %v249_v2, %v62_v60  ;;  %v146_v4 = vadd.f32 %v263_v6, %v124_v61 }
  0x1c   :  { %v176_v7 = vmax.f32 %v160_v62, 0.0  ;;  %v161_v1 = vadd.f32 %v145_v63, %v83_v56 }
  0x1d   :  { %191 = vst [vmem:[%s472_s6 + $0x60] sm:$0xff] %v175_v0  ;;  %v162_v5 = vadd.f32 %v146_v4, %v84_v3 }
  0x1e   :  { %192 = vst [vmem:[%s472_s6 + $0x68] sm:$0xff] %v176_v7  ;;  %v177_v8 = vmax.f32 %v161_v1, 0.0 }
  0x1f   :  { %v178_v9 = vmax.f32 %v162_v5, 0.0 }
  0x20   :  { %193 = vst [vmem:[%s472_s6 + $0x70] sm:$0xff] %v177_v8 }
  0x21   :  { %194 = vst [vmem:[%s472_s6 + $0x78] sm:$0xff] %v178_v9 }

// kernel: residual_block_forward.4
= control target key start
LH: loop header
LB: loop body
LE: loop exit
PB: predicated region body
PF: predicated region fallthrough
CT: control target
= control target key end

     0   :  { %vm203_vm0 = vcmask 1043456   ;;  %vm493_vm1 = vcmask 64512   ;;  %vm178_vm2 = vcmask 588800   ;;  %vm426_vm3 = vcmask 1040384   ;;  %s1136_s1 = inlined_call_operand.vmem [shape: bf16[72,128], index: 1, kind: input, shape index: {}]   ;;  %s1137_s4 = inlined_call_operand.vmem [shape: bf16[8,128], index: 4, kind: input, shape index: {}]   ;;  %s1138_s3 = inlined_call_operand.vmem [shape: bf16[128,8], index: 3, kind: input, shape index: {}]   ;;  %s1139_s0 = inlined_call_operand.vmem [shape: bf16[128,72], index: 0, kind: input, shape index: {}]   ;;  %s1140_s5 = inlined_call_operand.vmem [shape: f32[1,128], index: 5, kind: input, shape index: {}]   ;;  %s1141_s8 = inlined_call_operand.vmem [shape: f32[128,128], index: 8, kind: output, shape index: {2}]   ;;  %s1142_s2 = inlined_call_operand.vmem [shape: f32[1,128], index: 2, kind: input, shape index: {}]   ;;  %s1143_s6 = inlined_call_operand.vmem [shape: f32[128,128], index: 6, kind: output, shape index: {0}]   ;;  %s1144_s9 = inlined_call_operand.vmem [shape: f32[1,2,128], index: 9, kind: output, shape index: {3}]   ;;  %s1145_s7 = inlined_call_operand.vmem [shape: f32[1,2,128], index: 7, kind: output, shape index: {1}]  }
   0x1   :  { %v833_v0 = vld [vmem:[%s1136_s1] sm:$0xff]   ;;  %v834_v3 = vld [vmem:[%s1136_s1 + $0x8] sm:$0xff]   ;;  %v837_v6 = vld [vmem:[%s1136_s1 + $0x10] sm:$0xff]  }
   0x2   :  { %v445_v1 = vld [vmem:[%s1137_s4] sm:$0xf]  ;;  %787 = vmatprep.subr.bf16.mxu0 %v833_v0  ;;  %v836_v5 = vld [vmem:[%s1138_s3 + $0x8] sm:$0xff]   ;;  %v839_v7 = vld [vmem:[%s1138_s3 + $0x10] sm:$0xff]  }
   0x3   :  { %832 = vmatprep.subr.msk.bf16.mxu1 %vm203_vm0, %v445_v1  ;;  %v519_v2 = vsel %vm203_vm0, %v445_v1, 0  ;;  %788 = vmatpush3.bf16.msra.mxu0 %v833_v0  ;;  %v835_v4 = vld [vmem:[%s1138_s3] sm:$0xff]   ;;  %v838_v8 = vld [vmem:[%s1136_s1 + $0x18] sm:$0xff]   ;;  %v843_v14 = vld [vmem:[%s1139_s0 + $0x8] sm:$0xff]  }
   0x4   :  { %814 = vmatpush3.bf16.msra.mxu1 %v519_v2  ;;  %789 = vmatprep.subr.bf16.mxu0 %v834_v3  ;;  %v842_v9 = vld [vmem:[%s1139_s0] sm:$0xff]   ;;  %v840_v10 = vld [vmem:[%s1138_s3 + $0x18] sm:$0xff]   ;;  %v845_v15 = vld [vmem:[%s1138_s3 + $0x28] sm:$0xff]  }
   0x5   :  { %815 = vmatprep.mubr.msk.bf16.mxu1 %vm493_vm1, %v835_v4  ;;  %797 = vmatprep.mubr.msk.bf16.mxu0 %vm178_vm2, %v842_v9  ;;  %v844_v11 = vld [vmem:[%s1138_s3 + $0x20] sm:$0xff]   ;;  %v846_v16 = vld [vmem:[%s1139_s0 + $0x10] sm:$0xff]   ;;  %v847_v18 = vld [vmem:[%s1139_s0 + $0x18] sm:$0xff]  }
   0x6   :  { %v841_v12 = vld [vmem:[%s1136_s1 + $0x20] ss:$0 sps:$4 sm:$0xff]   ;;  %v848_v17 = vld [vmem:[%s1138_s3 + $0x30] sm:$0xff]   ;;  %v849_v19 = vld [vmem:[%s1138_s3 + $0x38] sm:$0xff]  }
   0x7   :  { %816 = vmatmul.mubr.msk.bf16.vlgmr.msra.gmra.mrb[0].mxu1 %vm493_vm1, %v836_v5  ;;  %790 = vmatpush3.bf16.msra.mxu0 %v834_v3  ;;  %v205_v13 = vsel %vm203_vm0, %v841_v12, 0  ;;  %v850_v20 = vld [vmem:[%s1139_s0 + $0x20] sm:$0xff]   ;;  %v851_v21 = vld [vmem:[%s1139_s0 + $0x28] sm:$0xff]   ;;  %v852_v22 = vld [vmem:[%s1139_s0 + $0x30] sm:$0xff]  }
   0x8   :  { %791 = vmatprep.subr.bf16.mxu0 %v837_v6  ;;  %819 = vmatprep.mubr.msk.bf16.mxu1 %vm493_vm1, %v839_v7  ;;  %v853_v23 = vld [vmem:[%s1139_s0 + $0x38] sm:$0xff]   ;;  %v993_v24 = vld [vmem:[%s1140_s5] ss:$0 sm:$0xff] }
   0x9   :  { %v1030_v57 = vld [vmem:[%s1142_s2] ss:$0 sm:$0xff] }
   0xb   :  { %792 = vmatpush3.bf16.msra.mxu0 %v837_v6 }
   0xc   :  { %793 = vmatprep.subr.bf16.mxu0 %v838_v8 }
   0xf   :  { %820 = vmatmul.mubr.msk.bf16.gmra.mrb[4].mxu1 %vm493_vm1, %v840_v10  ;;  %794 = vmatpush3.bf16.msra.mxu0 %v838_v8 }
  0x10   :  { %823 = vmatprep.mubr.msk.bf16.mxu1 %vm493_vm1, %v844_v11  ;;  %831 = vmatprep.subr.msk.bf16.mxu0 %vm203_vm0, %v841_v12 }
  0x13   :  { %796 = vmatpush3.bf16.msra.mxu0 %v205_v13 }
  0x16   :  { %798 = vmatmul.mubr.msk.bf16.vlgmr.msra.gmra.mrb[0].mxu0 %vm178_vm2, %v843_v14 }
  0x17   :  { %824 = vmatmul.mubr.msk.bf16.gmra.mrb[8].mxu1 %vm493_vm1, %v845_v15  ;;  %801 = vmatprep.mubr.msk.bf16.mxu0 %vm178_vm2, %v846_v16 }
  0x18   :  { %827 = vmatprep.mubr.msk.bf16.mxu1 %vm493_vm1, %v848_v17 }
  0x1e   :  { %802 = vmatmul.mubr.msk.bf16.gmra.mrb[4].mxu0 %vm178_vm2, %v847_v18 }
  0x1f   :  { %828 = vmatmul.mubr.msk.bf16.gmra.mrb[12].mxu1 %vm493_vm1, %v849_v19  ;;  %805 = vmatprep.mubr.msk.bf16.mxu0 %vm178_vm2, %v850_v20 }
  0x26   :  { %806 = vmatmul.mubr.msk.bf16.gmra.mrb[8].mxu0 %vm178_vm2, %v851_v21 }
  0x27   :  { %809 = vmatprep.mubr.msk.bf16.mxu0 %vm178_vm2, %v852_v22 }
  0x2e   :  { %810 = vmatmul.mubr.msk.bf16.gmra.mrb[12].mxu0 %vm178_vm2, %v853_v23 }
  0xda   :  { %v817_v25 = vpop.f32.mrb[0].mxu1 }
  0xdb   :  { %v564_v26 = vadd.f32 %v817_v25, %v993_v24  ;;  %v555_v27 = vpop.f32.mrb[1].mxu1 }
  0xdc   :  { %v556_v28 = vadd.f32 %v993_v24, %v555_v27  ;;  %v818_v29 = vpop.f32.mrb[2].mxu1 }
  0xdd   :  { %620 = vst [vmem:[%s1141_s8 + $0x10] sm:$0xff] %v564_v26  ;;  %v567_v30 = vadd.f32 %v818_v29, %v993_v24  ;;  %v558_v31 = vpop.f32.mrb[3].mxu1  ;;  %v673_v34 = vmul.f32 %v564_v26, %v564_v26 }
  0xde   :  { %618 = vst [vmem:[%s1141_s8] sm:$0xff] %v556_v28  ;;  %v671_v32 = vmul.f32 %v556_v28, %v556_v28  ;;  %v559_v33 = vadd.f32 %v993_v24, %v558_v31 }
  0xdf   :  { %621 = vst [vmem:[%s1141_s8 + $0x18] sm:$0xff] %v567_v30  ;;  %v674_v37 = vmul.f32 %v567_v30, %v567_v30 }
  0xe0   :  { %619 = vst [vmem:[%s1141_s8 + $0x8] sm:$0xff] %v559_v33  ;;  %v650_v35 = vadd.f32 %v559_v33, %v556_v28  ;;  %v672_v36 = vmul.f32 %v559_v33, %v559_v33 }
  0xe2   :  { %v651_v38 = vadd.f32 %v650_v35, %v564_v26  ;;  %v687_v39 = vadd.f32 %v672_v36, %v671_v32  ;;  %v821_v40 = vpop.f32.mrb[4].mxu1 }
  0xe3   :  { %v580_v41 = vadd.f32 %v821_v40, %v993_v24  ;;  %v571_v42 = vpop.f32.mrb[5].mxu1 }
  0xe4   :  { %v688_v43 = vadd.f32 %v687_v39, %v673_v34  ;;  %v572_v44 = vadd.f32 %v993_v24, %v571_v42  ;;  %v652_v45 = vadd.f32 %v651_v38, %v567_v30  ;;  %v822_v46 = vpop.f32.mrb[6].mxu1 }
  0xe5   :  { %624 = vst [vmem:[%s1141_s8 + $0x30] sm:$0xff] %v580_v41  ;;  %v583_v47 = vadd.f32 %v822_v46, %v993_v24  ;;  %v574_v48 = vpop.f32.mrb[7].mxu1  ;;  %v677_v53 = vmul.f32 %v580_v41, %v580_v41 }
  0xe6   :  { %622 = vst [vmem:[%s1141_s8 + $0x20] sm:$0xff] %v572_v44  ;;  %v653_v49 = vadd.f32 %v652_v45, %v572_v44  ;;  %v675_v50 = vmul.f32 %v572_v44, %v572_v44  ;;  %v689_v51 = vadd.f32 %v688_v43, %v674_v37  ;;  %v575_v52 = vadd.f32 %v993_v24, %v574_v48 }
  0xe7   :  { %625 = vst [vmem:[%s1141_s8 + $0x38] sm:$0xff] %v583_v47  ;;  %v678_v58 = vmul.f32 %v583_v47, %v583_v47 }
  0xe8   :  { %v690_v54 = vadd.f32 %v689_v51, %v675_v50  ;;  %623 = vst [vmem:[%s1141_s8 + $0x28] sm:$0xff] %v575_v52  ;;  %v654_v55 = vadd.f32 %v653_v49, %v575_v52  ;;  %v676_v56 = vmul.f32 %v575_v52, %v575_v52 }
  0xe9   :  { %v799_v61 = vpop.f32.mrb[0].mxu0 }
  0xea   :  { %v655_v59 = vadd.f32 %v654_v55, %v580_v41  ;;  %v691_v60 = vadd.f32 %v690_v54, %v676_v56  ;;  %v825_v62 = vpop.f32.mrb[8].mxu1  ;;  %v250_v63 = vadd.f32 %v799_v61, %v1030_v57  ;;  %v241_v0 = vpop.f32.mrb[1].mxu0 }
  0xeb   :  { %v596_v1 = vadd.f32 %v825_v62, %v993_v24  ;;  %v587_v2 = vpop.f32.mrb[9].mxu1  ;;  %v242_v4 = vadd.f32 %v1030_v57, %v241_v0  ;;  %v800_v5 = vpop.f32.mrb[2].mxu0 }
  0xec   :  { %v692_v3 = vadd.f32 %v691_v60, %v677_v53  ;;  %v588_v6 = vadd.f32 %v993_v24, %v587_v2  ;;  %v656_v7 = vadd.f32 %v655_v59, %v583_v47  ;;  %v826_v8 = vpop.f32.mrb[10].mxu1  ;;  %306 = vst [vmem:[%s1143_s6 + $0x10] sm:$0xff] %v250_v63  ;;  %v253_v9 = vadd.f32 %v800_v5, %v1030_v57  ;;  %v244_v10 = vpop.f32.mrb[3].mxu0 }
  0xed   :  { %628 = vst [vmem:[%s1141_s8 + $0x50] sm:$0xff] %v596_v1  ;;  %v599_v11 = vadd.f32 %v826_v8, %v993_v24  ;;  %v590_v12 = vpop.f32.mrb[11].mxu1  ;;  %304 = vst [vmem:[%s1143_s6] sm:$0xff] %v242_v4  ;;  %v245_v16 = vadd.f32 %v1030_v57, %v244_v10  ;;  %v389_v18 = vmul.f32 %v242_v4, %v242_v4 }
  0xee   :  { %626 = vst [vmem:[%s1141_s8 + $0x40] sm:$0xff] %v588_v6  ;;  %v657_v13 = vadd.f32 %v656_v7, %v588_v6  ;;  %v679_v14 = vmul.f32 %v588_v6, %v588_v6  ;;  %v693_v15 = vadd.f32 %v692_v3, %v678_v58  ;;  %307 = vst [vmem:[%s1143_s6 + $0x18] sm:$0xff] %v253_v9 }
  0xef   :  { %629 = vst [vmem:[%s1141_s8 + $0x58] sm:$0xff] %v599_v11  ;;  %v591_v17 = vadd.f32 %v993_v24, %v590_v12  ;;  %v681_v19 = vmul.f32 %v596_v1, %v596_v1  ;;  %305 = vst [vmem:[%s1143_s6 + $0x8] sm:$0xff] %v245_v16  ;;  %v368_v21 = vadd.f32 %v245_v16, %v242_v4 }
  0xf0   :  { %v694_v20 = vadd.f32 %v693_v15, %v679_v14  ;;  %v390_v22 = vmul.f32 %v245_v16, %v245_v16  ;;  %v391_v26 = vmul.f32 %v250_v63, %v250_v63  ;;  %v392_v27 = vmul.f32 %v253_v9, %v253_v9 }
  0xf1   :  { %627 = vst [vmem:[%s1141_s8 + $0x48] sm:$0xff] %v591_v17  ;;  %v658_v23 = vadd.f32 %v657_v13, %v591_v17  ;;  %v680_v25 = vmul.f32 %v591_v17, %v591_v17  ;;  %v682_v28 = vmul.f32 %v599_v11, %v599_v11  ;;  %v803_v29 = vpop.f32.mrb[4].mxu0  ;;  %v369_v31 = vadd.f32 %v368_v21, %v250_v63 }
  0xf2   :  { %v829_v30 = vpop.f32.mrb[12].mxu1  ;;  %v405_v32 = vadd.f32 %v390_v22, %v389_v18  ;;  %v257_v35 = vpop.f32.mrb[5].mxu0  ;;  %v266_v37 = vadd.f32 %v803_v29, %v1030_v57 }
  0xf3   :  { %v659_v33 = vadd.f32 %v658_v23, %v596_v1  ;;  %v695_v34 = vadd.f32 %v694_v20, %v680_v25  ;;  %v603_v36 = vpop.f32.mrb[13].mxu1  ;;  %v258_v38 = vadd.f32 %v1030_v57, %v257_v35  ;;  %v612_v39 = vadd.f32 %v829_v30, %v993_v24  ;;  %v804_v40 = vpop.f32.mrb[6].mxu0 }
  0xf4   :  { %v604_v41 = vadd.f32 %v993_v24, %v603_v36  ;;  %v830_v42 = vpop.f32.mrb[14].mxu1  ;;  %v406_v43 = vadd.f32 %v405_v32, %v391_v26  ;;  %v370_v45 = vadd.f32 %v369_v31, %v253_v9  ;;  %v269_v46 = vadd.f32 %v804_v40, %v1030_v57  ;;  %v260_v47 = vpop.f32.mrb[7].mxu0  ;;  %310 = vst [vmem:[%s1143_s6 + $0x30] sm:$0xff] %v266_v37 }
  0xf5   :  { %v696_v44 = vadd.f32 %v695_v34, %v681_v19  ;;  %v606_v48 = vpop.f32.mrb[15].mxu1  ;;  %308 = vst [vmem:[%s1143_s6 + $0x20] sm:$0xff] %v258_v38  ;;  %v393_v49 = vmul.f32 %v258_v38, %v258_v38  ;;  %632 = vst [vmem:[%s1141_s8 + $0x70] sm:$0xff] %v612_v39  ;;  %v660_v50 = vadd.f32 %v659_v33, %v599_v11 }
  0xf6   :  { %630 = vst [vmem:[%s1141_s8 + $0x60] sm:$0xff] %v604_v41  ;;  %v371_v51 = vadd.f32 %v370_v45, %v258_v38  ;;  %v407_v52 = vadd.f32 %v406_v43, %v392_v27  ;;  %311 = vst [vmem:[%s1143_s6 + $0x38] sm:$0xff] %v269_v46  ;;  %v683_v53 = vmul.f32 %v604_v41, %v604_v41 }
  0xf7   :  { %v661_v54 = vadd.f32 %v660_v50, %v604_v41  ;;  %v697_v55 = vadd.f32 %v696_v44, %v682_v28  ;;  %v261_v56 = vadd.f32 %v1030_v57, %v260_v47  ;;  %v615_v58 = vadd.f32 %v830_v42, %v993_v24 }
  0xf8   :  { %v408_v59 = vadd.f32 %v407_v52, %v393_v49  ;;  %v607_v60 = vadd.f32 %v993_v24, %v606_v48  ;;  %v395_v61 = vmul.f32 %v266_v37, %v266_v37  ;;  %v685_v2 = vmul.f32 %v612_v39, %v612_v39 }
  0xf9   :  { %v698_v62 = vadd.f32 %v697_v55, %v683_v53  ;;  %309 = vst [vmem:[%s1143_s6 + $0x28] sm:$0xff] %v261_v56  ;;  %v372_v63 = vadd.f32 %v371_v51, %v261_v56  ;;  %v394_v0 = vmul.f32 %v261_v56, %v261_v56  ;;  %633 = vst [vmem:[%s1141_s8 + $0x78] sm:$0xff] %v615_v58  ;;  %v807_v1 = vpop.f32.mrb[8].mxu0 }
  0xfa   :  { %631 = vst [vmem:[%s1141_s8 + $0x68] sm:$0xff] %v607_v60  ;;  %v662_v3 = vadd.f32 %v661_v54, %v607_v60  ;;  %v684_v24 = vmul.f32 %v607_v60, %v607_v60  ;;  %v282_v4 = vadd.f32 %v807_v1, %v1030_v57  ;;  %v273_v5 = vpop.f32.mrb[9].mxu0  ;;  %v396_v6 = vmul.f32 %v269_v46, %v269_v46 }
  0xfb   :  { %v373_v7 = vadd.f32 %v372_v63, %v266_v37  ;;  %v409_v8 = vadd.f32 %v408_v59, %v394_v0  ;;  %v274_v9 = vadd.f32 %v1030_v57, %v273_v5  ;;  %v808_v10 = vpop.f32.mrb[10].mxu0  ;;  %v686_v11 = vmul.f32 %v615_v58, %v615_v58 }
  0xfc   :  { %v663_v12 = vadd.f32 %v662_v3, %v612_v39  ;;  %v699_v13 = vadd.f32 %v698_v62, %v684_v24  ;;  %314 = vst [vmem:[%s1143_s6 + $0x50] sm:$0xff] %v282_v4  ;;  %v285_v14 = vadd.f32 %v808_v10, %v1030_v57  ;;  %v276_v15 = vpop.f32.mrb[11].mxu0  ;;  %v399_v35 = vmul.f32 %v282_v4, %v282_v4 }
  0xfd   :  { %v410_v16 = vadd.f32 %v409_v8, %v395_v61  ;;  %312 = vst [vmem:[%s1143_s6 + $0x40] sm:$0xff] %v274_v9  ;;  %v374_v17 = vadd.f32 %v373_v7, %v269_v46  ;;  %v397_v18 = vmul.f32 %v274_v9, %v274_v9  ;;  %v277_v19 = vadd.f32 %v1030_v57, %v276_v15 }
  0xfe   :  { %v664_v20 = vadd.f32 %v663_v12, %v615_v58  ;;  %v700_v21 = vadd.f32 %v699_v13, %v685_v2  ;;  %315 = vst [vmem:[%s1143_s6 + $0x58] sm:$0xff] %v285_v14  ;;  %v400_v42 = vmul.f32 %v285_v14, %v285_v14 }
  0xff   :  { %v375_v22 = vadd.f32 %v374_v17, %v274_v9  ;;  %v411_v23 = vadd.f32 %v410_v16, %v396_v6  ;;  %313 = vst [vmem:[%s1143_s6 + $0x48] sm:$0xff] %v277_v19  ;;  %v398_v25 = vmul.f32 %v277_v19, %v277_v19 }
 0x100   :  { %v665_v26 = vrot.slane %v664_v20, 4  ;;  %v701_v27 = vadd.f32 %v700_v21, %v686_v11 }
 0x101   :  { %v412_v28 = vadd.f32 %v411_v23, %v397_v18  ;;  %v376_v29 = vadd.f32 %v375_v22, %v277_v19  ;;  %v811_v30 = vpop.f32.mrb[12].mxu0 }
 0x102   :  { %v666_v31 = vadd.f32 %v665_v26, %v664_v20  ;;  %v702_v32 = vrot.slane %v701_v27, 4  ;;  %v298_v33 = vadd.f32 %v811_v30, %v1030_v57  ;;  %v289_v34 = vpop.f32.mrb[13].mxu0 }
 0x103   :  { %v377_v36 = vadd.f32 %v376_v29, %v282_v4  ;;  %v413_v37 = vadd.f32 %v412_v28, %v398_v25  ;;  %v290_v38 = vadd.f32 %v1030_v57, %v289_v34  ;;  %v812_v39 = vpop.f32.mrb[14].mxu0 }
 0x104   :  { %v667_v40 = vrot.slane %v666_v31, 2  ;;  %v703_v41 = vadd.f32 %v702_v32, %v701_v27  ;;  %318 = vst [vmem:[%s1143_s6 + $0x70] sm:$0xff] %v298_v33  ;;  %v301_v43 = vadd.f32 %v812_v39, %v1030_v57  ;;  %v292_v44 = vpop.f32.mrb[15].mxu0 }
 0x105   :  { %v414_v45 = vadd.f32 %v413_v37, %v399_v35  ;;  %316 = vst [vmem:[%s1143_s6 + $0x60] sm:$0xff] %v290_v38  ;;  %v378_v46 = vadd.f32 %v377_v36, %v285_v14  ;;  %v401_v47 = vmul.f32 %v290_v38, %v290_v38  ;;  %v293_v48 = vadd.f32 %v1030_v57, %v292_v44 }
 0x106   :  { %v668_v49 = vadd.f32 %v667_v40, %v666_v31  ;;  %v704_v50 = vrot.slane %v703_v41, 2  ;;  %319 = vst [vmem:[%s1143_s6 + $0x78] sm:$0xff] %v301_v43  ;;  %v403_v57 = vmul.f32 %v298_v33, %v298_v33  ;;  %v404_v0 = vmul.f32 %v301_v43, %v301_v43 }
 0x107   :  { %v379_v51 = vadd.f32 %v378_v46, %v290_v38  ;;  %v415_v52 = vadd.f32 %v414_v45, %v400_v42  ;;  %317 = vst [vmem:[%s1143_s6 + $0x68] sm:$0xff] %v293_v48  ;;  %v402_v53 = vmul.f32 %v293_v48, %v293_v48 }
 0x108   :  { %v669_v54 = vrot.slane %v668_v49, 1  ;;  %v705_v55 = vadd.f32 %v704_v50, %v703_v41 }
 0x109   :  { %v416_v56 = vadd.f32 %v415_v52, %v401_v47  ;;  %v380_v58 = vadd.f32 %v379_v51, %v293_v48 }
 0x10a   :  { %v670_v59 = vadd.f32 %v669_v54, %v668_v49  ;;  %v706_v60 = vrot.slane %v705_v55, 1 }
 0x10b   :  { %v381_v61 = vadd.f32 %v380_v58, %v298_v33  ;;  %v417_v62 = vadd.f32 %v416_v56, %v402_v53 }
 0x10c   :  { %v707_v63 = vadd.f32 %v706_v60, %v705_v55 }
 0x10d   :  { %v382_v1 = vadd.f32 %v381_v61, %v301_v43  ;;  %v418_v2 = vadd.f32 %v417_v62, %v403_v57 }
 0x10e   :  { %v708_v3 = vsel %vm426_vm3, %v670_v59, %v707_v63 }
 0x10f   :  { %709 = vst [vmem:[%s1144_s9] sm:$0x3] %v708_v3  ;;  %v383_v24 = vrot.slane %v382_v1, 4  ;;  %v419_v4 = vadd.f32 %v418_v2, %v404_v0 }
 0x111   :  { %v384_v5 = vadd.f32 %v383_v24, %v382_v1  ;;  %v420_v6 = vrot.slane %v419_v4, 4 }
 0x113   :  { %v385_v7 = vrot.slane %v384_v5, 2  ;;  %v421_v8 = vadd.f32 %v420_v6, %v419_v4 }
 0x115   :  { %v386_v9 = vadd.f32 %v385_v7, %v384_v5  ;;  %v422_v10 = vrot.slane %v421_v8, 2 }
 0x117   :  { %v387_v11 = vrot.slane %v386_v9, 1  ;;  %v423_v12 = vadd.f32 %v422_v10, %v421_v8 }
 0x119   :  { %v424_v13 = vrot.slane %v423_v12, 1  ;;  %v388_v14 = vadd.f32 %v387_v11, %v386_v9 }
 0x11b   :  { %v425_v15 = vadd.f32 %v424_v13, %v423_v12 }
 0x11d   :  { %v427_v16 = vsel %vm426_vm3, %v388_v14, %v425_v15 }
 0x11e   :  { %428 = vst [vmem:[%s1145_s7] sm:$0x3] %v427_v16 }

</bundles_post_ra>
